<compile_context>
chip_gen: v6e
topology: v6e:2x2x1
jax: 0.10.0
libtpu: 0.0.40
codegen_flags: <defaults>
</compile_context>

<pallas_src>
import jax
import jax.numpy as jnp
from jax.experimental import pallas as pl
from jax.experimental.pallas import tpu as pltpu

BN_EPS = 1e-5  # PyTorch BatchNorm1d default eps


def _round_up(x, m):
    return (x + m - 1) // m * m


def encoder_head_kernel(feat_ref, w_ref, b_ref, out_ref):
    # feat_ref: [tile_n, HW, C] -- C on the 128-wide lane axis, HW on sublanes.
    f = feat_ref[...].astype(jnp.float32)          # per-tile upcast (bf16 feature path)
    # F.relu(features)
    f = jnp.maximum(f, 0.0)
    # avg_pool2d(kernel=7): the 1/HW scale is folded into W', so only a sum here.
    pooled = jnp.sum(f, axis=1)                                        # [tile_n, C]
    # Linear + Dropout(eval)=identity + BatchNorm1d(eval), folded into W'/b'.
    out = jnp.dot(pooled, w_ref[...],
                  preferred_element_type=jnp.float32) + b_ref[...]     # [tile_n, E_pad]
    out_ref[...] = out.astype(out_ref.dtype)


def encoder_forward(features_nhwc, params, *, tile_n=16, out_dtype=jnp.float32):
    """features_nhwc: [N, H, W, C] backbone feature map -> [N, embed_size]."""
    N, H, W, C = features_nhwc.shape
    HW = H * W
    E = params["w_embed"].shape[1]

    # ---- fold avg-pool scale (1/HW) and eval-mode BatchNorm into the linear ----
    scale = params["bn_gamma"] * jax.lax.rsqrt(params["bn_var"] + BN_EPS)        # [1, E]
    w_fold = (params["w_embed"] * scale / HW).astype(jnp.float32)                # [C, E]
    b_fold = ((params["b_embed"] - params["bn_mean"]) * scale
              + params["bn_beta"]).astype(jnp.float32)                           # [1, E]

    # ---- pad embed dim to a lane-dense multiple of 128 (unmasked output stores) ----
    E_pad = _round_up(E, 128)
    if E_pad != E:
        w_fold = jnp.pad(w_fold, ((0, 0), (0, E_pad - E)))
        b_fold = jnp.pad(b_fold, ((0, 0), (0, E_pad - E)))

    # ---- channels-last view [N, HW, C]: contiguous collapse, no HBM traffic ----
    feat = features_nhwc.reshape(N, HW, C)

    # ---- batch tiling; no padding (Pallas masks the ragged edge block) ----
    if N <= 8:
        tile_n = N                                    # single full-dim block
    else:
        tile_n = (max(8, min(tile_n, N)) // 8) * 8    # sublane-granular tile
        if pl.cdiv(N, tile_n) < 2:                    # keep both v7x TCs busy
            tile_n = max(8, _round_up(pl.cdiv(N, 2), 8))
    n_tiles = pl.cdiv(N, tile_n)

    # ---- explicit VMEM budget from the real (padded) footprint ----
    feat_item = feat.dtype.itemsize
    out_item = jnp.dtype(out_dtype).itemsize
    sublane = {4: 8, 2: 16, 1: 32}.get(feat_item, 8)
    feat_tile_bytes = tile_n * _round_up(HW, sublane) * _round_up(C, 128) * feat_item
    w_bytes = _round_up(C, 8) * E_pad * 4
    b_bytes = 8 * E_pad * 4
    out_tile_bytes = _round_up(tile_n, 8) * E_pad * out_item
    vmem_bytes = (2 * feat_tile_bytes               # double-buffered feature tiles
                  + 2 * (w_bytes + b_bytes)         # worst case (fallback double-buffer)
                  + 2 * out_tile_bytes
                  + (2 << 20))                      # compiler scratch headroom
    vmem_bytes = int(min(max(vmem_bytes, 4 << 20), 100 << 20))

    cost = pl.CostEstimate(
        flops=2 * N * C * E_pad + 2 * N * HW * C,
        transcendentals=0,
        bytes_accessed=(N * HW * C * feat_item
                        + C * E_pad * 4 + E_pad * 4
                        + N * E_pad * out_item),
    )

    def build(weight_pipeline_mode):
        kw = {} if weight_pipeline_mode is None else dict(pipeline_mode=weight_pipeline_mode)
        return pl.pallas_call(
            encoder_head_kernel,
            out_shape=jax.ShapeDtypeStruct((N, E_pad), out_dtype),
            grid=(n_tiles,),
            in_specs=[
                # feature tile: double-buffered by the BlockSpec pipeline.
                pl.BlockSpec((tile_n, HW, C), lambda i: (i, 0, 0)),
                # folded weight / bias: constant index_map -> VMEM-resident.
                pl.BlockSpec((C, E_pad), lambda i: (0, 0), **kw),
                pl.BlockSpec((1, E_pad), lambda i: (0, 0), **kw),
            ],
            out_specs=pl.BlockSpec((tile_n, E_pad), lambda i: (i, 0)),
            compiler_params=pltpu.CompilerParams(
                dimension_semantics=("parallel",),
                vmem_limit_bytes=vmem_bytes),
            cost_estimate=cost,
        )

    try:
        # Single-buffer the constant weight/bias blocks (halves their VMEM footprint).
        out = build(pl.Buffered(1))(feat, w_fold, b_fold)
    except Exception:
        # Fallback for JAX versions that reject buffer_count=1.
        out = build(None)(feat, w_fold, b_fold)

    return out[:, :E]


def _reference(features_nhwc, params):
    """Pure-JAX reference with the original (unfolded) op order."""
    N, H, W, C = features_nhwc.shape
    f = jnp.maximum(features_nhwc.astype(jnp.float32), 0.0)
    pooled = jnp.mean(f.reshape(N, H * W, C), axis=1)
    emb = pooled @ params["w_embed"] + params["b_embed"]
    inv_std = jax.lax.rsqrt(params["bn_var"] + BN_EPS)
    return (emb - params["bn_mean"]) * inv_std * params["bn_gamma"] + params["bn_beta"]


if __name__ == "__main__":
    # Small stand-in shapes for the DenseNet-161 output ([N, 7, 7, 2208] channels-last)
    # and embed_size. N=10 exercises the multi-step grid and the ragged edge block.
    N, H, W, C, E = 10, 7, 7, 32, 32

    key = jax.random.PRNGKey(0)
    k_feat, k_w, k_b, k_g, k_be, k_m, k_v = jax.random.split(key, 7)

    features = jax.random.normal(k_feat, (N, H, W, C), jnp.float32)

    params = {
        # nn.Linear(C, E): torch weight is [E, C]; stored transposed [C, E] for x @ W.
        "w_embed": jax.random.normal(k_w, (C, E), jnp.float32) * 0.05,
        "b_embed": jax.random.normal(k_b, (1, E), jnp.float32) * 0.05,
        # BatchNorm1d(E) affine params + running stats (eval mode).
        "bn_gamma": 1.0 + 0.1 * jax.random.normal(k_g, (1, E), jnp.float32),
        "bn_beta": 0.1 * jax.random.normal(k_be, (1, E), jnp.float32),
        "bn_mean": 0.1 * jax.random.normal(k_m, (1, E), jnp.float32),
        "bn_var": jax.random.uniform(k_v, (1, E), jnp.float32, minval=0.5, maxval=1.5),
    }

    out = encoder_forward(features, params, tile_n=16)
    out = jax.block_until_ready(out)

    ref = _reference(features, params)
    assert out.shape == (N, E), out.shape
    max_err = float(jnp.max(jnp.abs(out - ref)))
    assert jnp.allclose(out, ref, atol=1e-4, rtol=1e-4), max_err

    print("KERNEL_OK")
</pallas_src>

<mosaic_0001>
module attributes {stable_mosaic.version = 11 : i64} {
  func.func @encoder_head_kernel(%arg0: i32, %arg1: memref<8x49x32xf32, #tpu.memory_space<vmem>>, %arg2: memref<32x128xf32, #tpu.memory_space<vmem>>, %arg3: memref<1x128xf32, #tpu.memory_space<vmem>>, %arg4: memref<8x128xf32, #tpu.memory_space<vmem>>) attributes {dimension_semantics = [#tpu.dimension_semantics<parallel>], iteration_bounds = array<i64: 2>, scalar_prefetch = 0 : i64, scratch_operands = 0 : i64, tpu.core_type = #tpu.core_type<tc>, window_params = [{transform_indices = @transform_0, window_bounds = array<i64: 8, 49, 32>}, {pipeline_mode = #tpu.pipeline_mode<synchronous>, transform_indices = @transform_1, window_bounds = array<i64: 32, 128>}, {pipeline_mode = #tpu.pipeline_mode<synchronous>, transform_indices = @transform_2, window_bounds = array<i64: 1, 128>}, {transform_indices = @transform_3, window_bounds = array<i64: 8, 128>}]} {
    %c0 = arith.constant 0 : index
    %c0_0 = arith.constant 0 : index
    %c0_1 = arith.constant 0 : index
    %0 = vector.load %arg1[%c0, %c0_0, %c0_1] : memref<8x49x32xf32, #tpu.memory_space<vmem>>, vector<8x49x32xf32>
    %cst = arith.constant 0.000000e+00 : f32
    %1 = vector.broadcast %cst : f32 to vector<8x49x32xf32>
    %2 = arith.maximumf %0, %1 : vector<8x49x32xf32>
    %cst_2 = arith.constant dense<0.000000e+00> : vector<8x32xf32>
    %3 = vector.multi_reduction <add>, %2, %cst_2 [1] : vector<8x49x32xf32> to vector<8x32xf32>
    %c0_3 = arith.constant 0 : index
    %c0_4 = arith.constant 0 : index
    %4 = vector.load %arg2[%c0_3, %c0_4] : memref<32x128xf32, #tpu.memory_space<vmem>>, vector<32x128xf32>
    %cst_5 = arith.constant dense<0.000000e+00> : vector<8x128xf32>
    %5 = tpu.matmul %3, %4, %cst_5 {dimension_numbers = #tpu.dot_dimension_numbers<[1], [0], [0], [1], [0, 0, 1, 1], [], []>} : vector<8x32xf32>, vector<32x128xf32>, vector<8x128xf32> -> vector<8x128xf32>
    %c0_6 = arith.constant 0 : index
    %c0_7 = arith.constant 0 : index
    %6 = vector.load %arg3[%c0_6, %c0_7] : memref<1x128xf32, #tpu.memory_space<vmem>>, vector<1x128xf32>
    %7 = vector.broadcast %6 : vector<1x128xf32> to vector<8x128xf32>
    %8 = arith.addf %5, %7 : vector<8x128xf32>
    %c0_8 = arith.constant 0 : index
    %c0_9 = arith.constant 0 : index
    %9 = vector.load %arg4[%c0_8, %c0_9] : memref<8x128xf32, #tpu.memory_space<vmem>>, vector<8x128xf32>
    tpu.vector_store %arg4[%c0_8, %c0_9], %8 {strides = array<i32>} : memref<8x128xf32, #tpu.memory_space<vmem>>, vector<8x128xf32>,
    return
  }
  func.func @transform_0(%arg0: i32) -> (i32, i32, i32) {
    %c0_i32 = arith.constant 0 : i32
    %c0_i32_0 = arith.constant 0 : i32
    %c0_i32_1 = arith.constant 0 : i32
    return %arg0, %c0_i32, %c0_i32_0 : i32, i32, i32
  }
  func.func @transform_1(%arg0: i32) -> (i32, i32) {
    %c0_i32 = arith.constant 0 : i32
    %c0_i32_0 = arith.constant 0 : i32
    %c0_i32_1 = arith.constant 0 : i32
    return %c0_i32, %c0_i32_0 : i32, i32
  }
  func.func @transform_2(%arg0: i32) -> (i32, i32) {
    %c0_i32 = arith.constant 0 : i32
    %c0_i32_0 = arith.constant 0 : i32
    %c0_i32_1 = arith.constant 0 : i32
    return %c0_i32, %c0_i32_0 : i32, i32
  }
  func.func @transform_3(%arg0: i32) -> (i32, i32) {
    %c0_i32 = arith.constant 0 : i32
    %c0_i32_0 = arith.constant 0 : i32
    return %arg0, %c0_i32 : i32, i32
  }
}

module attributes {stable_mosaic.version = 11 : i64} {
  func.func @encoder_head_kernel(%arg0: i32, %arg1: memref<8x49x32xf32, #tpu.memory_space<vmem>>, %arg2: memref<32x128xf32, #tpu.memory_space<vmem>>, %arg3: memref<1x128xf32, #tpu.memory_space<vmem>>, %arg4: memref<8x128xf32, #tpu.memory_space<vmem>>) attributes {dimension_semantics = [#tpu.dimension_semantics<parallel>], iteration_bounds = array<i64: 2>, scalar_prefetch = 0 : i64, scratch_operands = 0 : i64, tpu.core_type = #tpu.core_type<tc>, window_params = [{transform_indices = @transform_0, window_bounds = array<i64: 8, 49, 32>}, {pipeline_mode = #tpu.pipeline_mode<synchronous>, transform_indices = @transform_1, window_bounds = array<i64: 32, 128>}, {pipeline_mode = #tpu.pipeline_mode<synchronous>, transform_indices = @transform_2, window_bounds = array<i64: 1, 128>}, {transform_indices = @transform_3, window_bounds = array<i64: 8, 128>}]} {
    %c0 = arith.constant 0 : index
    %c0_0 = arith.constant 0 : index
    %c0_1 = arith.constant 0 : index
    %0 = vector.load %arg1[%c0, %c0_0, %c0_1] : memref<8x49x32xf32, #tpu.memory_space<vmem>>, vector<8x49x32xf32>
    %cst = arith.constant 0.000000e+00 : f32
    %1 = vector.broadcast %cst : f32 to vector<8x49x32xf32>
    %2 = arith.maximumf %0, %1 : vector<8x49x32xf32>
    %cst_2 = arith.constant dense<0.000000e+00> : vector<8x32xf32>
    %3 = vector.multi_reduction <add>, %2, %cst_2 [1] : vector<8x49x32xf32> to vector<8x32xf32>
    %c0_3 = arith.constant 0 : index
    %c0_4 = arith.constant 0 : index
    %4 = vector.load %arg2[%c0_3, %c0_4] : memref<32x128xf32, #tpu.memory_space<vmem>>, vector<32x128xf32>
    %cst_5 = arith.constant dense<0.000000e+00> : vector<8x128xf32>
    %5 = tpu.matmul %3, %4, %cst_5 {dimension_numbers = #tpu.dot_dimension_numbers<[1], [0], [0], [1], [0, 0, 1, 1], [], []>} : vector<8x32xf32>, vector<32x128xf32>, vector<8x128xf32> -> vector<8x128xf32>
    %c0_6 = arith.constant 0 : index
    %c0_7 = arith.constant 0 : index
    %6 = vector.load %arg3[%c0_6, %c0_7] : memref<1x128xf32, #tpu.memory_space<vmem>>, vector<1x128xf32>
    %7 = vector.broadcast %6 : vector<1x128xf32> to vector<8x128xf32>
    %8 = arith.addf %5, %7 : vector<8x128xf32>
    %c0_8 = arith.constant 0 : index
    %c0_9 = arith.constant 0 : index
    %9 = vector.load %arg4[%c0_8, %c0_9] : memref<8x128xf32, #tpu.memory_space<vmem>>, vector<8x128xf32>
    tpu.vector_store %arg4[%c0_8, %c0_9], %8 {strides = array<i32>} : memref<8x128xf32, #tpu.memory_space<vmem>>, vector<8x128xf32>,
    return
  }
  func.func @transform_0(%arg0: i32) -> (i32, i32, i32) {
    %c0_i32 = arith.constant 0 : i32
    %c0_i32_0 = arith.constant 0 : i32
    %c0_i32_1 = arith.constant 0 : i32
    return %arg0, %c0_i32, %c0_i32_0 : i32, i32, i32
  }
  func.func @transform_1(%arg0: i32) -> (i32, i32) {
    %c0_i32 = arith.constant 0 : i32
    %c0_i32_0 = arith.constant 0 : i32
    %c0_i32_1 = arith.constant 0 : i32
    return %c0_i32, %c0_i32_0 : i32, i32
  }
  func.func @transform_2(%arg0: i32) -> (i32, i32) {
    %c0_i32 = arith.constant 0 : i32
    %c0_i32_0 = arith.constant 0 : i32
    %c0_i32_1 = arith.constant 0 : i32
    return %c0_i32, %c0_i32_0 : i32, i32
  }
  func.func @transform_3(%arg0: i32) -> (i32, i32) {
    %c0_i32 = arith.constant 0 : i32
    %c0_i32_0 = arith.constant 0 : i32
    return %arg0, %c0_i32 : i32, i32
  }
}

</mosaic_0001>

<bundles_post_ra>
// kernel: tpu_custom_call.1
= control target key start
LH: loop header
LB: loop body
LE: loop exit
PB: predicated region body
PF: predicated region fallthrough
CT: control target
= control target key end

     0   :  { %8 = vsyncpa [#allocation3], 0  ;;  %s1286_s0 = inlined_call_operand.vmem [shape: f32[10,49,32], index: 0, kind: input, shape index: {}]   ;;  %s1287_s1 = inlined_call_operand.vmem [shape: f32[32,128], index: 1, kind: input, shape index: {}]   ;;  %s1288_s2 = inlined_call_operand.vmem [shape: f32[1,128], index: 2, kind: input, shape index: {}]   ;;  %s1289_s3 = inlined_call_operand.hbm [shape: f32[10,128], index: 3, kind: output, shape index: {}]  }
   0x1   :  { %10 = vsyncpa [#allocation3 + $0x1], 0  ;;  %s800_s12 = smov 0   ;;  %s802_s13 = smov 0  }
   0x2   :  { %s804_s14 = smov 0   ;;  %s806_s15 = smov 0  }
   0x3 LB: > { %s821_s16 = sadd.s32 4294967295, %s775_s15   ;;  %s644_s17 = sadd.s32 4294967294, %s775_s15   ;;  %s775_s15 = sphi %s806_s15, %s1343_s15   ;;  %s771_s14 = sphi %s804_s14, %s1342_s14   ;;  %s767_s13 = sphi %s802_s13, %s1341_s13   ;;  %s763_s12 = sphi %s800_s12, %s1340_s12  }
   0x4   : > { %s825_s18 = sadd.s32 1, %s775_s15   ;;  %s91_s19 = sadd.s32 1, %s771_s14 }
   0x5   : > { %s88_s20 = ssub.s32 %s775_s15, %s825_s18  ;;  %p101_p0 = scmp.ne.s32.totalorder %s771_s14, %s767_s13 }
   0x6   : > { %p89_p1 = scmp.eq.s32.totalorder %s88_s20, 0  ;;  %p102_p2 = scmp.eq.s32.totalorder %s821_s16, 1 }
   0x7   : > { %p107_p3 = scmp.ne.s32.totalorder %s767_s13, %s763_s12  ;;  %p108_p4 = scmp.eq.s32.totalorder %s644_s17, 1 }
   0x8   : > { %s836_s21 = scalar_select %p89_p1, %s771_s14, %s91_s19  }
   0x9   : > { %p838_p5 = por %p102_p2, %p101_p0  ;;  %p842_p6 = por %p108_p4, %p107_p3 }
   0xa   : > { %p647_p7 = scmp.ge.s32.totalorder %s775_s15, 1  ;;  %p152_p8 = scmp.lt.s32.totalorder %s775_s15, 3 }
   0xc   : > { %p153_p9 = pnand %p647_p7, %p152_p8 }
   0xd   : > { %s649_s26 = sshll.u32 (!%p153_p9), %s821_s16, 3  ;;  %s179_s10 = sand.u32 (!%p153_p9), 1, %s767_s13  }
   0xe   : > { %156 = sbr.rel (%p153_p9) target bundleno = 301 (0x12d), region = 32  ;;  %p188_p10 = scmp.lt.s32.totalorder (!%p153_p9), %s649_s26, 9 }
   0xf   : > { %s648_s11 = sshll.u32 (!%p153_p9), %s179_s10, 3  ;;  %s654_s20 = sshll.u32 (!%p153_p9), %s821_s16, 7 }
  0x10   : > { %s181_s24 = scalar_lea.vmem (!%p153_p9), [#allocation2], %s648_s11  ;;  %s1251_s28 = scalar_lea.hbm (!%p153_p9), %s1289_s3, %s654_s20 }
  0x11   : > { %s585_s25 = sshll.u32 (!%p153_p9), %s181_s24, 4  ;;  %s572_s29 = scalar_lea.sflag (!%p153_p9), [#allocation3], %s179_s10  ;;  %s586_s25 = int_to_ptr.vmem [resolvable:$true] %s585_s25 }
  0x12   : > { %s715_s30 = scalar_lea.vmem (!%p153_p9), %s586_s25, 128  ;;  %s779_s4 = smov (!%p153_p9), [#allocation2]  }
  0x13   : > { %v468_v0 = vld [vmem:[%s1287_s1 + $0x18] sm:$0xff]  ;;  %v777_v1 = vmov 0.0   ;;  %v467_v2 = vld [vmem:[%s1287_s1 + $0x10] sm:$0xff]  ;;  %vm778_vm0 = vmmov 0   ;;  %v466_v3 = vld [vmem:[%s1287_s1 + $0x8] sm:$0xff]  ;;  %s1345_s26 = smov (!%p188_p10, %s649_s26), 9  ;;  %p716_p11 = scmp.ne.s32.totalorder %s586_s25, %s715_s30 }
  0x14   : > { %662 = vmatprep.subr.mxu0 %v777_v1  ;;  %670 = vmatprep.mubr.msk.f32.mxu0 %vm778_vm0, %v777_v1  ;;  %v465_v4 = vld [vmem:[%s1287_s1] sm:$0xff]  ;;  %s673_s6 = smul.u32 56, %s1345_s26  ;;  %vm311_vm1 = vcmask 261120   ;;  %vm323_vm2 = vcmask 253952   ;;  %vm484_vm3 = vcmask 1041409   ;;  %vm486_vm4 = vcmask 1042434  }
  0x15   : > { %663 = vmatpush3.msra.mxu0 %v468_v0  ;;  %vm488_vm5 = vcmask 1043459   ;;  %vm490_vm6 = vcmask 1044484   ;;  %vm492_vm7 = vcmask 1045509   ;;  %vm494_vm8 = vcmask 1046534   ;;  %p717_p12 = pnand %p716_p11, %p838_p5  ;;  %s719_s16 = sshll.u32 %s779_s4, 4  ;;  %s720_s16 = int_to_ptr.vmem [resolvable:$false] %s719_s16 }
  0x16   : > { %664 = vmatprep.subr.mxu0 %v777_v1  ;;  %s864_s9 = scalar_lea.vmem %s1286_s0, %s673_s6  ;;  %vm496_vm9 = vcmask 1047559   ;;  %s721_s5 = scalar_lea.vmem %s720_s16, 256 }
  0x17   : > { %665 = vmatpush3.msra.mxu0 %v467_v2  ;;  %v867_v5 = vld [vmem:[%s864_s9] sm:$0xff]  ;;  %v870_v6 = vld [vmem:[%s864_s9 + $0x8] sm:$0xff]  ;;  %v873_v7 = vld [vmem:[%s864_s9 + $0x10] sm:$0xff]  ;;  %p718_p13 = pneg %p717_p12  ;;  %p722_p0 = scmp.lt.s32.totalorder %s586_s25, %s720_s16 }
  0x18   : > { %666 = vmatprep.subr.mxu0 %v777_v1  ;;  %v876_v8 = vld [vmem:[%s864_s9 + $0x18] sm:$0xff]  ;;  %v879_v9 = vld [vmem:[%s864_s9 + $0x20] sm:$0xff]  ;;  %v882_v10 = vld [vmem:[%s864_s9 + $0x28] sm:$0xff]  ;;  %v255_v15 = vmax.f32 %v867_v5, 0.0  ;;  %v256_v16 = vmax.f32 %v870_v6, 0.0  ;;  %v257_v20 = vmax.f32 %v873_v7, 0.0  ;;  %p723_p1 = scmp.lt.s32.totalorder %s721_s5, %s715_s30 }
  0x19   : > { %667 = vmatpush3.msra.mxu0 %v466_v3  ;;  %v885_v11 = vld [vmem:[%s864_s9 + $0x30] sm:$0x1]  ;;  %v888_v12 = vld [vmem:[%s864_s9 + $0x38] sm:$0xff]  ;;  %v891_v13 = vld [vmem:[%s864_s9 + $0x40] sm:$0xff]  ;;  %v1292_v21 = vmax.f32 %v876_v8, 0.0  ;;  %v1296_v54 = vmax.f32 %v879_v9, 0.0 }
  0x1a   : > { %668 = vmatprep.subr.mxu0 %v777_v1  ;;  %v894_v14 = vld [vmem:[%s864_s9 + $0x48] sm:$0xff]  ;;  %v899_v17 = vld [vmem:[%s864_s9 + $0x50] sm:$0xff]  ;;  %v902_v18 = vld [vmem:[%s864_s9 + $0x58] sm:$0xff]  ;;  %v312_v49 = vsel %vm311_vm1, %v255_v15, 0.0  ;;  %v313_v43 = vsel %vm311_vm1, %v256_v16, 0.0  ;;  %v315_v31 = vsel %vm311_vm1, %v257_v20, 0.0  ;;  %p724_p2 = por %p723_p1, %p722_p0 }
  0x1b   : > { %669 = vmatpush3.msra.mxu0 %v465_v4  ;;  %v905_v19 = vld [vmem:[%s864_s9 + $0x60] sm:$0xff]  ;;  %v911_v23 = vld [vmem:[%s864_s9 + $0x68] sm:$0x1]  ;;  %v914_v24 = vld [vmem:[%s864_s9 + $0x70] sm:$0xff]  ;;  %v314_v32 = vadd.f32 %v313_v43, %v312_v49  ;;  %v317_v5 = vsel %vm311_vm1, %v1292_v21, 0.0  ;;  %v1293_v15 = vmax.f32 %v888_v12, 0.0 }
  0x1c   : > { %v917_v25 = vld [vmem:[%s864_s9 + $0x78] sm:$0xff]  ;;  %v922_v28 = vld [vmem:[%s864_s9 + $0x80] sm:$0xff]  ;;  %v925_v29 = vld [vmem:[%s864_s9 + $0x88] sm:$0xff]  ;;  %v1294_v16 = vmax.f32 %v891_v13, 0.0  ;;  %v1295_v20 = vmax.f32 %v894_v14, 0.0  ;;  %v319_v43 = vsel %vm311_vm1, %v1296_v54, 0.0  ;;  %p725_p3 = pnand %p724_p2, %p718_p13 }
  0x1d   : > { %v928_v30 = vld [vmem:[%s864_s9 + $0x90] sm:$0xff]  ;;  %v934_v34 = vld [vmem:[%s864_s9 + $0x98] sm:$0xff]  ;;  %v937_v35 = vld [vmem:[%s864_s9 + $0xa0] sm:$0x1]  ;;  %v332_v6 = vsel %vm311_vm1, %v1293_v15, 0.0  ;;  %v316_v37 = vadd.f32 %v315_v31, %v314_v32  ;;  %v1297_v8 = vmax.f32 %v882_v10, 0.0 }
  0x1e   : > { %v943_v39 = vld [vmem:[%s864_s9 + $0xa8] sm:$0xff]  ;;  %v946_v40 = vld [vmem:[%s864_s9 + $0xb0] sm:$0xff]  ;;  %v949_v41 = vld [vmem:[%s864_s9 + $0xb8] sm:$0xff]  ;;  %v333_v7 = vsel %vm311_vm1, %v1294_v16, 0.0  ;;  %v335_v38 = vsel %vm311_vm1, %v1295_v20, 0.0  ;;  %v1298_v49 = vmax.f32 %v885_v11, 0.0 }
  0x1f   : > { %v955_v45 = vld [vmem:[%s864_s9 + $0xc0] sm:$0xff]  ;;  %v958_v46 = vld [vmem:[%s864_s9 + $0xc8] sm:$0xff]  ;;  %v961_v47 = vld [vmem:[%s864_s9 + $0xd0] sm:$0xff]  ;;  %v321_v21 = vsel %vm311_vm1, %v1297_v8, 0.0  ;;  %v334_v12 = vadd.f32 %v333_v7, %v332_v6  ;;  %v1299_v15 = vmax.f32 %v899_v17, 0.0  ;;  %v1300_v16 = vmax.f32 %v914_v24, 0.0 }
  0x20   : > { %v967_v51 = vld [vmem:[%s864_s9 + $0xd8] sm:$0x1]  ;;  %v970_v52 = vld [vmem:[%s864_s9 + $0xe0] sm:$0xff]  ;;  %v973_v53 = vld [vmem:[%s864_s9 + $0xe8] sm:$0xff]  ;;  %v324_v13 = vsel %vm323_vm2, %v1298_v49, 0.0  ;;  %v1301_v9 = vmax.f32 %v917_v25, 0.0  ;;  %v318_v10 = vadd.f32 %v317_v5, %v316_v37 }
  0x21   : > { %v978_v56 = vld [vmem:[%s864_s9 + $0xf0] sm:$0xff]  ;;  %v981_v57 = vld [vmem:[%s864_s9 + $0xf8] sm:$0xff]  ;;  %v984_v58 = vld [vmem:[%s864_s9 + $0x100] sm:$0xff]  ;;  %v337_v14 = vsel %vm311_vm1, %v1299_v15, 0.0  ;;  %v351_v31 = vsel %vm311_vm1, %v1300_v16, 0.0  ;;  %v336_v54 = vadd.f32 %v335_v38, %v334_v12  ;;  %v1302_v6 = vmax.f32 %v922_v28, 0.0 }
  0x22   : > { %v990_v62 = vld [vmem:[%s864_s9 + $0x108] sm:$0xff]  ;;  %v993_v63 = vld [vmem:[%s864_s9 + $0x110] sm:$0x1]  ;;  %v996_v0 = vld [vmem:[%s864_s9 + $0x118] sm:$0xff]  ;;  %v352_v32 = vsel %vm311_vm1, %v1301_v9, 0.0  ;;  %v1303_v7 = vmax.f32 %v902_v18, 0.0  ;;  %v320_v5 = vadd.f32 %v319_v43, %v318_v10 }
  0x23   : > { %v1001_v3 = vld [vmem:[%s864_s9 + $0x120] sm:$0xff]  ;;  %v1004_v4 = vld [vmem:[%s864_s9 + $0x128] sm:$0xff]  ;;  %v1007_v55 = vld [vmem:[%s864_s9 + $0x130] sm:$0xff]  ;;  %v353_v20 = vadd.f32 %v352_v32, %v351_v31  ;;  %v354_v11 = vsel %vm311_vm1, %v1302_v6, 0.0  ;;  %v1304_v8 = vmax.f32 %v905_v19, 0.0  ;;  %v1305_v49 = vmax.f32 %v911_v23, 0.0 }
  0x24   : > { %v1013_v1 = vld [vmem:[%s864_s9 + $0x138] sm:$0xff]  ;;  %v1016_v50 = vld [vmem:[%s864_s9 + $0x140] sm:$0xff]  ;;  %v1019_v2 = vld [vmem:[%s864_s9 + $0x148] sm:$0x1]  ;;  %v339_v17 = vsel %vm311_vm1, %v1303_v7, 0.0  ;;  %v1306_v37 = vmax.f32 %v925_v29, 0.0  ;;  %v338_v28 = vadd.f32 %v337_v14, %v336_v54  ;;  %v322_v32 = vadd.f32 %v321_v21, %v320_v5 }
  0x25   : > { %v1024_v61 = vld [vmem:[%s864_s9 + $0x150] sm:$0xff]  ;;  %v1027_v42 = vld [vmem:[%s864_s9 + $0x158] sm:$0xff]  ;;  %v1030_v60 = vld [vmem:[%s864_s9 + $0x160] sm:$0xff]  ;;  %v341_v24 = vsel %vm311_vm1, %v1304_v8, 0.0  ;;  %v343_v25 = vsel %vm323_vm2, %v1305_v49, 0.0  ;;  %v355_v12 = vadd.f32 %v354_v11, %v353_v20  ;;  %v1307_v15 = vmax.f32 %v943_v39, 0.0 }
  0x26   : > { %v1036_v48 = vld [vmem:[%s864_s9 + $0x168] sm:$0xff]  ;;  %v1039_v44 = vld [vmem:[%s864_s9 + $0x170] sm:$0xff]  ;;  %v1042_v59 = vld [vmem:[%s864_s9 + $0x178] sm:$0xff]  ;;  %v297_v36 = vmax.f32 %v1024_v61, 0.0  ;;  %v356_v38 = vsel %vm311_vm1, %v1306_v37, 0.0  ;;  %v1308_v16 = vmax.f32 %v928_v30, 0.0  ;;  %v340_v39 = vadd.f32 %v339_v17, %v338_v28 }
  0x27   : > { %v1048_v27 = vld [vmem:[%s864_s9 + $0x180] sm:$0x1]  ;;  %v1051_v26 = vld [vmem:[%s864_s9 + $0x188] sm:$0xff]  ;;  %v1057_v22 = vld [vmem:[%s864_s9 + $0x190] sm:$0xff]  ;;  %v370_v18 = vsel %vm311_vm1, %v1307_v15, 0.0  ;;  %v1309_v31 = vmax.f32 %v934_v34, 0.0  ;;  %v357_v10 = vadd.f32 %v356_v38, %v355_v12  ;;  %v325_v21 = vadd.f32 %v324_v13, %v322_v32 }
  0x28   : > { %v1060_v33 = vld [vmem:[%s864_s9 + $0x198] sm:$0xff]  ;;  %v358_v19 = vsel %vm311_vm1, %v1308_v16, 0.0  ;;  %v1310_v9 = vmax.f32 %v946_v40, 0.0  ;;  %v1311_v43 = vmax.f32 %v949_v41, 0.0  ;;  %v1312_v30 = vmax.f32 %v937_v35, 0.0 }
  0x29   : > { %v360_v23 = vsel %vm311_vm1, %v1309_v31, 0.0  ;;  %v1313_v34 = vmax.f32 %v955_v45, 0.0  ;;  %v1314_v40 = vmax.f32 %v970_v52, 0.0  ;;  %v1315_v41 = vmax.f32 %v973_v53, 0.0 }
  0x2a   : > { %v371_v29 = vsel %vm311_vm1, %v1310_v9, 0.0  ;;  %v373_v14 = vsel %vm311_vm1, %v1311_v43, 0.0  ;;  %v362_v20 = vsel %vm323_vm2, %v1312_v30, 0.0  ;;  %v342_v17 = vadd.f32 %v341_v24, %v340_v39 }
  0x2b   : > { %v372_v54 = vadd.f32 %v371_v29, %v370_v18  ;;  %v375_v6 = vsel %vm311_vm1, %v1313_v34, 0.0  ;;  %v389_v11 = vsel %vm311_vm1, %v1314_v40, 0.0  ;;  %v390_v7 = vsel %vm311_vm1, %v1315_v41, 0.0 }
  0x2c   : > { %v359_v8 = vadd.f32 %v358_v19, %v357_v10  ;;  %v1316_v35 = vmax.f32 %v958_v46, 0.0  ;;  %v391_v38 = vadd.f32 %v390_v7, %v389_v11  ;;  %v1317_v45 = vmax.f32 %v978_v56, 0.0  ;;  %v1184_v10 = vld [vmem:[%s864_s9 + $0x1a8] sm:$0xff] }
  0x2d   : > { %v374_v49 = vadd.f32 %v373_v14, %v372_v54  ;;  %v1318_v52 = vmax.f32 %v981_v57, 0.0  ;;  %v326_v53 = vrot.slane %v325_v21, 4  ;;  %v344_v12 = vadd.f32 %v343_v25, %v342_v17 }
  0x2e   : > { %v377_v37 = vsel %vm311_vm1, %v1316_v35, 0.0  ;;  %v392_v5 = vsel %vm311_vm1, %v1317_v45, 0.0  ;;  %v361_v13 = vadd.f32 %v360_v23, %v359_v8  ;;  %v1319_v15 = vmax.f32 %v961_v47, 0.0 }
  0x2f   : > { %v394_v28 = vsel %vm311_vm1, %v1318_v52, 0.0  ;;  %v376_v24 = vadd.f32 %v375_v6, %v374_v49  ;;  %v393_v18 = vadd.f32 %v392_v5, %v391_v38  ;;  %v1320_v16 = vmax.f32 %v984_v58, 0.0  ;;  %v253_v38 = vld [vmem:[%s864_s9 + $0x1b0] sm:$0xff] }
  0x30   : > { %v379_v46 = vsel %vm311_vm1, %v1319_v15, 0.0  ;;  %v1321_v19 = vmax.f32 %v996_v0, 0.0  ;;  %v327_v31 = vadd.f32 %v326_v53, %v325_v21  ;;  %v345_v9 = vrot.slane %v344_v12, 4  ;;  %v251_v0 = vld [vmem:[%s864_s9 + $0x1a0] sm:$0xff]  ;;  %v254_v53 = vld [vmem:[%s864_s9 + $0x1b8] sm:$0x1] }
  0x31   : > { %v396_v56 = vsel %vm311_vm1, %v1320_v16, 0.0  ;;  %v363_v29 = vadd.f32 %v362_v20, %v361_v13  ;;  %v378_v25 = vadd.f32 %v377_v37, %v376_v24  ;;  %v1322_v23 = vmax.f32 %v967_v51, 0.0 }
  0x32   : > { %v408_v57 = vsel %vm311_vm1, %v1321_v19, 0.0  ;;  %v395_v47 = vadd.f32 %v394_v28, %v393_v18  ;;  %v1323_v14 = vmax.f32 %v990_v62, 0.0  ;;  %v1324_v58 = vmax.f32 %v1001_v3, 0.0 }
  0x33   : > { %v381_v43 = vsel %vm323_vm2, %v1322_v23, 0.0  ;;  %v346_v54 = vadd.f32 %v345_v9, %v344_v12  ;;  %v364_v30 = vrot.slane %v363_v29, 4  ;;  %v380_v20 = vadd.f32 %v379_v46, %v378_v25 }
  0x34   : > { %v398_v32 = vsel %vm311_vm1, %v1323_v14, 0.0  ;;  %v409_v39 = vsel %vm311_vm1, %v1324_v58, 0.0  ;;  %v1325_v51 = vmax.f32 %v1004_v4, 0.0  ;;  %v397_v6 = vadd.f32 %v396_v56, %v395_v47 }
  0x35   : > { %v1326_v62 = vmax.f32 %v993_v63, 0.0  ;;  %v410_v3 = vadd.f32 %v409_v39, %v408_v57  ;;  %v1327_v11 = vmax.f32 %v1007_v55, 0.0  ;;  %v328_v7 = vrot.slane %v327_v31, 2 }
  0x36   : > { %v411_v34 = vsel %vm311_vm1, %v1325_v51, 0.0  ;;  %v347_v21 = vrot.slane %v346_v54, 2  ;;  %v365_v17 = vadd.f32 %v364_v30, %v363_v29  ;;  %v382_v8 = vadd.f32 %v381_v43, %v380_v20 }
  0x37   : > { %v400_v40 = vsel %vm323_vm2, %v1326_v62, 0.0  ;;  %v413_v41 = vsel %vm311_vm1, %v1327_v11, 0.0  ;;  %v307_v49 = vmax.f32 %v251_v0, 0.0  ;;  %v308_v4 = vmax.f32 %v1184_v10, 0.0 }
  0x38   : > { %v399_v35 = vadd.f32 %v398_v32, %v397_v6  ;;  %v412_v37 = vadd.f32 %v411_v34, %v410_v3  ;;  %v383_v45 = vrot.slane %v382_v8, 4  ;;  %v1328_v63 = vmax.f32 %v1013_v1, 0.0 }
  0x39   : > { %v1329_v52 = vmax.f32 %v1016_v50, 0.0  ;;  %v427_v28 = vsel %vm311_vm1, %v297_v36, 0.0  ;;  %v366_v12 = vrot.slane %v365_v17, 2  ;;  %v1330_v15 = vmax.f32 %v1027_v42, 0.0 }
  0x3a   : > { %v415_v5 = vsel %vm311_vm1, %v1328_v63, 0.0  ;;  %v401_v13 = vadd.f32 %v400_v40, %v399_v35  ;;  %v414_v24 = vadd.f32 %v413_v41, %v412_v37  ;;  %v329_v18 = vadd.f32 %v328_v7, %v327_v31 }
  0x3b   : > { %v417_v55 = vsel %vm311_vm1, %v1329_v52, 0.0  ;;  %v428_v46 = vsel %vm311_vm1, %v1330_v15, 0.0  ;;  %v348_v1 = vadd.f32 %v347_v21, %v346_v54  ;;  %v384_v16 = vadd.f32 %v383_v45, %v382_v8 }
  0x3c   : > { %v1331_v56 = vmax.f32 %v1030_v60, 0.0  ;;  %v309_v19 = vmax.f32 %v253_v38, 0.0  ;;  %v402_v57 = vrot.slane %v401_v13, 4  ;;  %v416_v61 = vadd.f32 %v415_v5, %v414_v24 }
  0x3d   : > { %v429_v9 = vadd.f32 %v428_v46, %v427_v28  ;;  %v310_v36 = vmax.f32 %v254_v53, 0.0  ;;  %v385_v29 = vrot.slane %v384_v16, 2  ;;  %v1332_v25 = vmax.f32 %v1019_v2, 0.0 }
  0x3e   : > { %v430_v50 = vsel %vm311_vm1, %v1331_v56, 0.0  ;;  %v1333_v23 = vmax.f32 %v1036_v48, 0.0  ;;  %v367_v43 = vadd.f32 %v366_v12, %v365_v17  ;;  %v403_v47 = vadd.f32 %v402_v57, %v401_v13 }
  0x3f   : > { %v419_v42 = vsel %vm323_vm2, %v1332_v25, 0.0  ;;  %v418_v60 = vadd.f32 %v417_v55, %v416_v61  ;;  %v431_v14 = vadd.f32 %v430_v50, %v429_v9  ;;  %v330_v32 = vrot.slane %v329_v18, 1 }
  0x40   : > { %v432_v31 = vsel %vm311_vm1, %v1333_v23, 0.0  ;;  %v349_v58 = vrot.slane %v348_v1, 1  ;;  %v1334_v39 = vmax.f32 %v1039_v44, 0.0  ;;  %v1335_v10 = vmax.f32 %v1051_v26, 0.0 }
  0x41   : > { %v404_v54 = vrot.slane %v403_v47, 2  ;;  %v420_v30 = vadd.f32 %v419_v42, %v418_v60  ;;  %v433_v20 = vadd.f32 %v432_v31, %v431_v14  ;;  %v1336_v48 = vmax.f32 %v1057_v22, 0.0 }
  0x42   : > { %v434_v0 = vsel %vm311_vm1, %v1334_v39, 0.0  ;;  %v446_v2 = vsel %vm311_vm1, %v1335_v10, 0.0  ;;  %v386_v34 = vadd.f32 %v385_v29, %v384_v16  ;;  %v1337_v6 = vmax.f32 %v1042_v59, 0.0 }
  0x43   : > { %v447_v51 = vsel %vm311_vm1, %v1336_v48, 0.0  ;;  %v1338_v44 = vmax.f32 %v1060_v33, 0.0  ;;  %v368_v26 = vrot.slane %v367_v43, 1  ;;  %v421_v11 = vrot.slane %v420_v30, 4 }
  0x44   : > { %v436_v62 = vsel %vm311_vm1, %v1337_v6, 0.0  ;;  %v448_v40 = vadd.f32 %v447_v51, %v446_v2  ;;  %v435_v41 = vadd.f32 %v434_v0, %v433_v20  ;;  %v451_v7 = vsel %vm311_vm1, %v307_v49, 0.0 }
  0x45   : > { %v449_v3 = vsel %vm311_vm1, %v1338_v44, 0.0  ;;  %v331_v21 = vadd.f32 %v330_v32, %v329_v18  ;;  %v350_v17 = vadd.f32 %v349_v58, %v348_v1  ;;  %v1339_v22 = vmax.f32 %v1048_v27, 0.0  ;;  %v651_v58 = vld [vmem:[%s1288_s2] ss:$0 sm:$0xff] }
  0x46   : > { %v450_v35 = vadd.f32 %v449_v3, %v448_v40  ;;  %v405_v59 = vadd.f32 %v404_v54, %v403_v47  ;;  %v422_v37 = vadd.f32 %v421_v11, %v420_v30  ;;  %v437_v38 = vadd.f32 %v436_v62, %v435_v41 }
  0x47   : > { %v438_v8 = vsel %vm323_vm2, %v1339_v22, 0.0  ;;  %v453_v45 = vsel %vm311_vm1, %v308_v4, 0.0  ;;  %v387_v33 = vrot.slane %v386_v34, 1  ;;  %v369_v5 = vadd.f32 %v368_v26, %v367_v43 }
  0x48   : > { %v452_v63 = vadd.f32 %v451_v7, %v450_v35  ;;  %v423_v52 = vrot.slane %v422_v37, 2  ;;  %v439_v55 = vadd.f32 %v438_v8, %v437_v38  ;;  %v455_v28 = vsel %vm311_vm1, %v309_v19, 0.0 }
  0x49   : > { %v485_v53 = vsel %vm484_vm3, %v350_v17, %v331_v21  ;;  %v406_v27 = vrot.slane %v405_v59, 1  ;;  %v457_v24 = vsel %vm323_vm2, %v310_v36, 0.0  ;;  %v388_v15 = vadd.f32 %v387_v33, %v386_v34 }
  0x4a   : > { %v454_v49 = vadd.f32 %v453_v45, %v452_v63  ;;  %v424_v12 = vadd.f32 %v423_v52, %v422_v37  ;;  %v440_v13 = vrot.slane %v439_v55, 4  ;;  %v487_v4 = vsel %vm486_vm4, %v369_v5, %v485_v53 }
  0x4b   : > { %v407_v56 = vadd.f32 %v406_v27, %v405_v59  ;;  %v489_v19 = vsel %vm488_vm5, %v388_v15, %v487_v4 }
  0x4c   : > { %v456_v46 = vadd.f32 %v455_v28, %v454_v49  ;;  %v441_v18 = vadd.f32 %v440_v13, %v439_v55  ;;  %v425_v1 = vrot.slane %v424_v12, 1 }
  0x4d   : > { %v491_v42 = vsel %vm490_vm6, %v407_v56, %v489_v19 }
  0x4e   : > { %v458_v16 = vadd.f32 %v457_v24, %v456_v46  ;;  %v442_v50 = vrot.slane %v441_v18, 2  ;;  %v426_v9 = vadd.f32 %v425_v1, %v424_v12 }
  0x50   : > { %v459_v57 = vrot.slane %v458_v16, 4  ;;  %v443_v61 = vadd.f32 %v442_v50, %v441_v18  ;;  %v493_v43 = vsel %vm492_vm7, %v426_v9, %v491_v42 }
  0x52   : > { %v460_v29 = vadd.f32 %v459_v57, %v458_v16  ;;  %v444_v25 = vrot.slane %v443_v61, 1 }
  0x54   : > { %v461_v36 = vrot.slane %v460_v29, 2  ;;  %v445_v23 = vadd.f32 %v444_v25, %v443_v61 }
  0x56   : > { %v462_v31 = vadd.f32 %v461_v36, %v460_v29  ;;  %v495_v60 = vsel %vm494_vm8, %v445_v23, %v493_v43 }
  0x58   : > { %v463_v47 = vrot.slane %v462_v31, 1 }
  0x5a   : > { %v464_v14 = vadd.f32 %v463_v47, %v462_v31 }
  0x5c   : > { %v497_v32 = vsel %vm496_vm9, %v464_v14, %v495_v60 }
  0x5d   : > { %671 = vmatmul.mubr.msk.f32.vlgmr.msra.gmra.mxu0 %vm311_vm1, %v497_v32 }
 0x11d   : > { %v566_v39 = vpop.f32.mrf.mxu0 }
 0x11e   : > { %v567_v0 = vadd.f32 %v651_v58, %v566_v39 }
 0x11f   : > { %v672_v10 = vpop.f32.mrf.mxu0 }
 0x120   : > { %570 = vst [vmem:[%s181_s24] sm:$0xff] %v567_v0 }
 0x121   : > { %728 = shalt.err (!%p725_p3)
}
 0x122   : > { %s729_s6 = scalar_lea.hbm %s1251_s28, 128  ;;  %s733_s9 = scalar_lea.hbm %s1289_s3, 256 }
 0x123   : > { %p730_p4 = scmp.ne.s32.totalorder %s1251_s28, %s729_s6  ;;  %p734_p9 = scmp.lt.s32.totalorder %s1251_s28, %s1289_s3 }
 0x124   : > { %p735_p10 = scmp.lt.s32.totalorder %s733_s9, %s729_s6 }
 0x125   : > { %p731_p7 = pnand %p730_p4, %p838_p5 }
 0x126   : > { %p736_p11 = por %p735_p10, %p734_p9 }
 0x127   : > { %p732_p8 = pneg %p731_p7 }
 0x129   : > { %p737_p12 = pnand %p736_p11, %p732_p8 }
 0x12b   : > { %740 = shalt.err (!%p737_p12)
}
 0x12c   : > { %674 = dma.vmem_to_hbm [thread:$0]  (%p838_p5), %s586_s25, 128, %s1251_s28, %s572_s29  }
 0x12d PF: > { %p680_p13 = scmp.ge.s32.totalorder %s775_s15, 2  ;;  %s597_s17 = sand.u32 1, %s763_s12  }
 0x12e   : > { %s598_s19 = scalar_lea.sflag [#allocation3], %s597_s17 }
 0x12f   : > { %p677_p0 = pnand %p680_p13, %p842_p6 }
 0x131   : > { %p678_p1 = pneg %p677_p0 }
 0x133   : > { %758 = dma.done.wait (%p678_p1), %s598_s19, 128  }
 0x134   : > { %760 = vsyncadd (%p678_p1), %s598_s19, 4294967168  ;;  %p13_p2 = scmp.ge.s32.totalorder %s825_s18, 4   ;;  %s1340_s12 = smov %s767_s13 }
 0x135   : > { %s1341_s13 = smov %s771_s14  ;;  %s1342_s14 = smov %s836_s21 }
 0x136   : > { %s1343_s15 = smov %s825_s18  ;;  %15 = sbr.rel (!%p13_p2) target bundleno = 3 (0x3), region = 67 }
 0x13b   :  { %603 = vsyncpa [#allocation3], 1 }
 0x13c   :  { %605 = vsyncpa [#allocation3 + $0x1], 1 }

// kernel: tpu_custom_call.1
= control target key start
LH: loop header
LB: loop body
LE: loop exit
PB: predicated region body
PF: predicated region fallthrough
CT: control target
= control target key end

     0   :  { %8 = vsyncpa [#allocation3], 0  ;;  %s1286_s0 = inlined_call_operand.vmem [shape: f32[10,49,32], index: 0, kind: input, shape index: {}]   ;;  %s1287_s1 = inlined_call_operand.vmem [shape: f32[32,128], index: 1, kind: input, shape index: {}]   ;;  %s1288_s2 = inlined_call_operand.vmem [shape: f32[1,128], index: 2, kind: input, shape index: {}]   ;;  %s1289_s3 = inlined_call_operand.hbm [shape: f32[10,128], index: 3, kind: output, shape index: {}]  }
   0x1   :  { %10 = vsyncpa [#allocation3 + $0x1], 0  ;;  %s800_s12 = smov 0   ;;  %s802_s13 = smov 0  }
   0x2   :  { %s804_s14 = smov 0   ;;  %s806_s15 = smov 0  }
   0x3 LB: > { %s821_s16 = sadd.s32 4294967295, %s775_s15   ;;  %s644_s17 = sadd.s32 4294967294, %s775_s15   ;;  %s775_s15 = sphi %s806_s15, %s1343_s15   ;;  %s771_s14 = sphi %s804_s14, %s1342_s14   ;;  %s767_s13 = sphi %s802_s13, %s1341_s13   ;;  %s763_s12 = sphi %s800_s12, %s1340_s12  }
   0x4   : > { %s825_s18 = sadd.s32 1, %s775_s15   ;;  %s91_s19 = sadd.s32 1, %s771_s14 }
   0x5   : > { %s88_s20 = ssub.s32 %s775_s15, %s825_s18  ;;  %p101_p0 = scmp.ne.s32.totalorder %s771_s14, %s767_s13 }
   0x6   : > { %p89_p1 = scmp.eq.s32.totalorder %s88_s20, 0  ;;  %p102_p2 = scmp.eq.s32.totalorder %s821_s16, 1 }
   0x7   : > { %p107_p3 = scmp.ne.s32.totalorder %s767_s13, %s763_s12  ;;  %p108_p4 = scmp.eq.s32.totalorder %s644_s17, 1 }
   0x8   : > { %s836_s21 = scalar_select %p89_p1, %s771_s14, %s91_s19  }
   0x9   : > { %p838_p5 = por %p102_p2, %p101_p0  ;;  %p842_p6 = por %p108_p4, %p107_p3 }
   0xa   : > { %p647_p7 = scmp.ge.s32.totalorder %s775_s15, 1  ;;  %p152_p8 = scmp.lt.s32.totalorder %s775_s15, 3 }
   0xc   : > { %p153_p9 = pnand %p647_p7, %p152_p8 }
   0xd   : > { %s649_s26 = sshll.u32 (!%p153_p9), %s821_s16, 3  ;;  %s179_s10 = sand.u32 (!%p153_p9), 1, %s767_s13  }
   0xe   : > { %156 = sbr.rel (%p153_p9) target bundleno = 301 (0x12d), region = 32  ;;  %p188_p10 = scmp.lt.s32.totalorder (!%p153_p9), %s649_s26, 9 }
   0xf   : > { %s648_s11 = sshll.u32 (!%p153_p9), %s179_s10, 3  ;;  %s654_s20 = sshll.u32 (!%p153_p9), %s821_s16, 7 }
  0x10   : > { %s181_s24 = scalar_lea.vmem (!%p153_p9), [#allocation2], %s648_s11  ;;  %s1251_s28 = scalar_lea.hbm (!%p153_p9), %s1289_s3, %s654_s20 }
  0x11   : > { %s585_s25 = sshll.u32 (!%p153_p9), %s181_s24, 4  ;;  %s572_s29 = scalar_lea.sflag (!%p153_p9), [#allocation3], %s179_s10  ;;  %s586_s25 = int_to_ptr.vmem [resolvable:$true] %s585_s25 }
  0x12   : > { %s715_s30 = scalar_lea.vmem (!%p153_p9), %s586_s25, 128  ;;  %s779_s4 = smov (!%p153_p9), [#allocation2]  }
  0x13   : > { %v468_v0 = vld [vmem:[%s1287_s1 + $0x18] sm:$0xff]  ;;  %v777_v1 = vmov 0.0   ;;  %v467_v2 = vld [vmem:[%s1287_s1 + $0x10] sm:$0xff]  ;;  %vm778_vm0 = vmmov 0   ;;  %v466_v3 = vld [vmem:[%s1287_s1 + $0x8] sm:$0xff]  ;;  %s1345_s26 = smov (!%p188_p10, %s649_s26), 9  ;;  %p716_p11 = scmp.ne.s32.totalorder %s586_s25, %s715_s30 }
  0x14   : > { %662 = vmatprep.subr.mxu0 %v777_v1  ;;  %670 = vmatprep.mubr.msk.f32.mxu0 %vm778_vm0, %v777_v1  ;;  %v465_v4 = vld [vmem:[%s1287_s1] sm:$0xff]  ;;  %s673_s6 = smul.u32 56, %s1345_s26  ;;  %vm311_vm1 = vcmask 261120   ;;  %vm323_vm2 = vcmask 253952   ;;  %vm484_vm3 = vcmask 1041409   ;;  %vm486_vm4 = vcmask 1042434  }
  0x15   : > { %663 = vmatpush3.msra.mxu0 %v468_v0  ;;  %vm488_vm5 = vcmask 1043459   ;;  %vm490_vm6 = vcmask 1044484   ;;  %vm492_vm7 = vcmask 1045509   ;;  %vm494_vm8 = vcmask 1046534   ;;  %p717_p12 = pnand %p716_p11, %p838_p5  ;;  %s719_s16 = sshll.u32 %s779_s4, 4  ;;  %s720_s16 = int_to_ptr.vmem [resolvable:$false] %s719_s16 }
  0x16   : > { %664 = vmatprep.subr.mxu0 %v777_v1  ;;  %s864_s9 = scalar_lea.vmem %s1286_s0, %s673_s6  ;;  %vm496_vm9 = vcmask 1047559   ;;  %s721_s5 = scalar_lea.vmem %s720_s16, 256 }
  0x17   : > { %665 = vmatpush3.msra.mxu0 %v467_v2  ;;  %v867_v5 = vld [vmem:[%s864_s9] sm:$0xff]  ;;  %v870_v6 = vld [vmem:[%s864_s9 + $0x8] sm:$0xff]  ;;  %v873_v7 = vld [vmem:[%s864_s9 + $0x10] sm:$0xff]  ;;  %p718_p13 = pneg %p717_p12  ;;  %p722_p0 = scmp.lt.s32.totalorder %s586_s25, %s720_s16 }
  0x18   : > { %666 = vmatprep.subr.mxu0 %v777_v1  ;;  %v876_v8 = vld [vmem:[%s864_s9 + $0x18] sm:$0xff]  ;;  %v879_v9 = vld [vmem:[%s864_s9 + $0x20] sm:$0xff]  ;;  %v882_v10 = vld [vmem:[%s864_s9 + $0x28] sm:$0xff]  ;;  %v255_v15 = vmax.f32 %v867_v5, 0.0  ;;  %v256_v16 = vmax.f32 %v870_v6, 0.0  ;;  %v257_v20 = vmax.f32 %v873_v7, 0.0  ;;  %p723_p1 = scmp.lt.s32.totalorder %s721_s5, %s715_s30 }
  0x19   : > { %667 = vmatpush3.msra.mxu0 %v466_v3  ;;  %v885_v11 = vld [vmem:[%s864_s9 + $0x30] sm:$0x1]  ;;  %v888_v12 = vld [vmem:[%s864_s9 + $0x38] sm:$0xff]  ;;  %v891_v13 = vld [vmem:[%s864_s9 + $0x40] sm:$0xff]  ;;  %v1292_v21 = vmax.f32 %v876_v8, 0.0  ;;  %v1296_v54 = vmax.f32 %v879_v9, 0.0 }
  0x1a   : > { %668 = vmatprep.subr.mxu0 %v777_v1  ;;  %v894_v14 = vld [vmem:[%s864_s9 + $0x48] sm:$0xff]  ;;  %v899_v17 = vld [vmem:[%s864_s9 + $0x50] sm:$0xff]  ;;  %v902_v18 = vld [vmem:[%s864_s9 + $0x58] sm:$0xff]  ;;  %v312_v49 = vsel %vm311_vm1, %v255_v15, 0.0  ;;  %v313_v43 = vsel %vm311_vm1, %v256_v16, 0.0  ;;  %v315_v31 = vsel %vm311_vm1, %v257_v20, 0.0  ;;  %p724_p2 = por %p723_p1, %p722_p0 }
  0x1b   : > { %669 = vmatpush3.msra.mxu0 %v465_v4  ;;  %v905_v19 = vld [vmem:[%s864_s9 + $0x60] sm:$0xff]  ;;  %v911_v23 = vld [vmem:[%s864_s9 + $0x68] sm:$0x1]  ;;  %v914_v24 = vld [vmem:[%s864_s9 + $0x70] sm:$0xff]  ;;  %v314_v32 = vadd.f32 %v313_v43, %v312_v49  ;;  %v317_v5 = vsel %vm311_vm1, %v1292_v21, 0.0  ;;  %v1293_v15 = vmax.f32 %v888_v12, 0.0 }
  0x1c   : > { %v917_v25 = vld [vmem:[%s864_s9 + $0x78] sm:$0xff]  ;;  %v922_v28 = vld [vmem:[%s864_s9 + $0x80] sm:$0xff]  ;;  %v925_v29 = vld [vmem:[%s864_s9 + $0x88] sm:$0xff]  ;;  %v1294_v16 = vmax.f32 %v891_v13, 0.0  ;;  %v1295_v20 = vmax.f32 %v894_v14, 0.0  ;;  %v319_v43 = vsel %vm311_vm1, %v1296_v54, 0.0  ;;  %p725_p3 = pnand %p724_p2, %p718_p13 }
  0x1d   : > { %v928_v30 = vld [vmem:[%s864_s9 + $0x90] sm:$0xff]  ;;  %v934_v34 = vld [vmem:[%s864_s9 + $0x98] sm:$0xff]  ;;  %v937_v35 = vld [vmem:[%s864_s9 + $0xa0] sm:$0x1]  ;;  %v332_v6 = vsel %vm311_vm1, %v1293_v15, 0.0  ;;  %v316_v37 = vadd.f32 %v315_v31, %v314_v32  ;;  %v1297_v8 = vmax.f32 %v882_v10, 0.0 }
  0x1e   : > { %v943_v39 = vld [vmem:[%s864_s9 + $0xa8] sm:$0xff]  ;;  %v946_v40 = vld [vmem:[%s864_s9 + $0xb0] sm:$0xff]  ;;  %v949_v41 = vld [vmem:[%s864_s9 + $0xb8] sm:$0xff]  ;;  %v333_v7 = vsel %vm311_vm1, %v1294_v16, 0.0  ;;  %v335_v38 = vsel %vm311_vm1, %v1295_v20, 0.0  ;;  %v1298_v49 = vmax.f32 %v885_v11, 0.0 }
  0x1f   : > { %v955_v45 = vld [vmem:[%s864_s9 + $0xc0] sm:$0xff]  ;;  %v958_v46 = vld [vmem:[%s864_s9 + $0xc8] sm:$0xff]  ;;  %v961_v47 = vld [vmem:[%s864_s9 + $0xd0] sm:$0xff]  ;;  %v321_v21 = vsel %vm311_vm1, %v1297_v8, 0.0  ;;  %v334_v12 = vadd.f32 %v333_v7, %v332_v6  ;;  %v1299_v15 = vmax.f32 %v899_v17, 0.0  ;;  %v1300_v16 = vmax.f32 %v914_v24, 0.0 }
  0x20   : > { %v967_v51 = vld [vmem:[%s864_s9 + $0xd8] sm:$0x1]  ;;  %v970_v52 = vld [vmem:[%s864_s9 + $0xe0] sm:$0xff]  ;;  %v973_v53 = vld [vmem:[%s864_s9 + $0xe8] sm:$0xff]  ;;  %v324_v13 = vsel %vm323_vm2, %v1298_v49, 0.0  ;;  %v1301_v9 = vmax.f32 %v917_v25, 0.0  ;;  %v318_v10 = vadd.f32 %v317_v5, %v316_v37 }
  0x21   : > { %v978_v56 = vld [vmem:[%s864_s9 + $0xf0] sm:$0xff]  ;;  %v981_v57 = vld [vmem:[%s864_s9 + $0xf8] sm:$0xff]  ;;  %v984_v58 = vld [vmem:[%s864_s9 + $0x100] sm:$0xff]  ;;  %v337_v14 = vsel %vm311_vm1, %v1299_v15, 0.0  ;;  %v351_v31 = vsel %vm311_vm1, %v1300_v16, 0.0  ;;  %v336_v54 = vadd.f32 %v335_v38, %v334_v12  ;;  %v1302_v6 = vmax.f32 %v922_v28, 0.0 }
  0x22   : > { %v990_v62 = vld [vmem:[%s864_s9 + $0x108] sm:$0xff]  ;;  %v993_v63 = vld [vmem:[%s864_s9 + $0x110] sm:$0x1]  ;;  %v996_v0 = vld [vmem:[%s864_s9 + $0x118] sm:$0xff]  ;;  %v352_v32 = vsel %vm311_vm1, %v1301_v9, 0.0  ;;  %v1303_v7 = vmax.f32 %v902_v18, 0.0  ;;  %v320_v5 = vadd.f32 %v319_v43, %v318_v10 }
  0x23   : > { %v1001_v3 = vld [vmem:[%s864_s9 + $0x120] sm:$0xff]  ;;  %v1004_v4 = vld [vmem:[%s864_s9 + $0x128] sm:$0xff]  ;;  %v1007_v55 = vld [vmem:[%s864_s9 + $0x130] sm:$0xff]  ;;  %v353_v20 = vadd.f32 %v352_v32, %v351_v31  ;;  %v354_v11 = vsel %vm311_vm1, %v1302_v6, 0.0  ;;  %v1304_v8 = vmax.f32 %v905_v19, 0.0  ;;  %v1305_v49 = vmax.f32 %v911_v23, 0.0 }
  0x24   : > { %v1013_v1 = vld [vmem:[%s864_s9 + $0x138] sm:$0xff]  ;;  %v1016_v50 = vld [vmem:[%s864_s9 + $0x140] sm:$0xff]  ;;  %v1019_v2 = vld [vmem:[%s864_s9 + $0x148] sm:$0x1]  ;;  %v339_v17 = vsel %vm311_vm1, %v1303_v7, 0.0  ;;  %v1306_v37 = vmax.f32 %v925_v29, 0.0  ;;  %v338_v28 = vadd.f32 %v337_v14, %v336_v54  ;;  %v322_v32 = vadd.f32 %v321_v21, %v320_v5 }
  0x25   : > { %v1024_v61 = vld [vmem:[%s864_s9 + $0x150] sm:$0xff]  ;;  %v1027_v42 = vld [vmem:[%s864_s9 + $0x158] sm:$0xff]  ;;  %v1030_v60 = vld [vmem:[%s864_s9 + $0x160] sm:$0xff]  ;;  %v341_v24 = vsel %vm311_vm1, %v1304_v8, 0.0  ;;  %v343_v25 = vsel %vm323_vm2, %v1305_v49, 0.0  ;;  %v355_v12 = vadd.f32 %v354_v11, %v353_v20  ;;  %v1307_v15 = vmax.f32 %v943_v39, 0.0 }
  0x26   : > { %v1036_v48 = vld [vmem:[%s864_s9 + $0x168] sm:$0xff]  ;;  %v1039_v44 = vld [vmem:[%s864_s9 + $0x170] sm:$0xff]  ;;  %v1042_v59 = vld [vmem:[%s864_s9 + $0x178] sm:$0xff]  ;;  %v297_v36 = vmax.f32 %v1024_v61, 0.0  ;;  %v356_v38 = vsel %vm311_vm1, %v1306_v37, 0.0  ;;  %v1308_v16 = vmax.f32 %v928_v30, 0.0  ;;  %v340_v39 = vadd.f32 %v339_v17, %v338_v28 }
  0x27   : > { %v1048_v27 = vld [vmem:[%s864_s9 + $0x180] sm:$0x1]  ;;  %v1051_v26 = vld [vmem:[%s864_s9 + $0x188] sm:$0xff]  ;;  %v1057_v22 = vld [vmem:[%s864_s9 + $0x190] sm:$0xff]  ;;  %v370_v18 = vsel %vm311_vm1, %v1307_v15, 0.0  ;;  %v1309_v31 = vmax.f32 %v934_v34, 0.0  ;;  %v357_v10 = vadd.f32 %v356_v38, %v355_v12  ;;  %v325_v21 = vadd.f32 %v324_v13, %v322_v32 }
  0x28   : > { %v1060_v33 = vld [vmem:[%s864_s9 + $0x198] sm:$0xff]  ;;  %v358_v19 = vsel %vm311_vm1, %v1308_v16, 0.0  ;;  %v1310_v9 = vmax.f32 %v946_v40, 0.0  ;;  %v1311_v43 = vmax.f32 %v949_v41, 0.0  ;;  %v1312_v30 = vmax.f32 %v937_v35, 0.0 }
  0x29   : > { %v360_v23 = vsel %vm311_vm1, %v1309_v31, 0.0  ;;  %v1313_v34 = vmax.f32 %v955_v45, 0.0  ;;  %v1314_v40 = vmax.f32 %v970_v52, 0.0  ;;  %v1315_v41 = vmax.f32 %v973_v53, 0.0 }
  0x2a   : > { %v371_v29 = vsel %vm311_vm1, %v1310_v9, 0.0  ;;  %v373_v14 = vsel %vm311_vm1, %v1311_v43, 0.0  ;;  %v362_v20 = vsel %vm323_vm2, %v1312_v30, 0.0  ;;  %v342_v17 = vadd.f32 %v341_v24, %v340_v39 }
  0x2b   : > { %v372_v54 = vadd.f32 %v371_v29, %v370_v18  ;;  %v375_v6 = vsel %vm311_vm1, %v1313_v34, 0.0  ;;  %v389_v11 = vsel %vm311_vm1, %v1314_v40, 0.0  ;;  %v390_v7 = vsel %vm311_vm1, %v1315_v41, 0.0 }
  0x2c   : > { %v359_v8 = vadd.f32 %v358_v19, %v357_v10  ;;  %v1316_v35 = vmax.f32 %v958_v46, 0.0  ;;  %v391_v38 = vadd.f32 %v390_v7, %v389_v11  ;;  %v1317_v45 = vmax.f32 %v978_v56, 0.0  ;;  %v1184_v10 = vld [vmem:[%s864_s9 + $0x1a8] sm:$0xff] }
  0x2d   : > { %v374_v49 = vadd.f32 %v373_v14, %v372_v54  ;;  %v1318_v52 = vmax.f32 %v981_v57, 0.0  ;;  %v326_v53 = vrot.slane %v325_v21, 4  ;;  %v344_v12 = vadd.f32 %v343_v25, %v342_v17 }
  0x2e   : > { %v377_v37 = vsel %vm311_vm1, %v1316_v35, 0.0  ;;  %v392_v5 = vsel %vm311_vm1, %v1317_v45, 0.0  ;;  %v361_v13 = vadd.f32 %v360_v23, %v359_v8  ;;  %v1319_v15 = vmax.f32 %v961_v47, 0.0 }
  0x2f   : > { %v394_v28 = vsel %vm311_vm1, %v1318_v52, 0.0  ;;  %v376_v24 = vadd.f32 %v375_v6, %v374_v49  ;;  %v393_v18 = vadd.f32 %v392_v5, %v391_v38  ;;  %v1320_v16 = vmax.f32 %v984_v58, 0.0  ;;  %v253_v38 = vld [vmem:[%s864_s9 + $0x1b0] sm:$0xff] }
  0x30   : > { %v379_v46 = vsel %vm311_vm1, %v1319_v15, 0.0  ;;  %v1321_v19 = vmax.f32 %v996_v0, 0.0  ;;  %v327_v31 = vadd.f32 %v326_v53, %v325_v21  ;;  %v345_v9 = vrot.slane %v344_v12, 4  ;;  %v251_v0 = vld [vmem:[%s864_s9 + $0x1a0] sm:$0xff]  ;;  %v254_v53 = vld [vmem:[%s864_s9 + $0x1b8] sm:$0x1] }
  0x31   : > { %v396_v56 = vsel %vm311_vm1, %v1320_v16, 0.0  ;;  %v363_v29 = vadd.f32 %v362_v20, %v361_v13  ;;  %v378_v25 = vadd.f32 %v377_v37, %v376_v24  ;;  %v1322_v23 = vmax.f32 %v967_v51, 0.0 }
  0x32   : > { %v408_v57 = vsel %vm311_vm1, %v1321_v19, 0.0  ;;  %v395_v47 = vadd.f32 %v394_v28, %v393_v18  ;;  %v1323_v14 = vmax.f32 %v990_v62, 0.0  ;;  %v1324_v58 = vmax.f32 %v1001_v3, 0.0 }
  0x33   : > { %v381_v43 = vsel %vm323_vm2, %v1322_v23, 0.0  ;;  %v346_v54 = vadd.f32 %v345_v9, %v344_v12  ;;  %v364_v30 = vrot.slane %v363_v29, 4  ;;  %v380_v20 = vadd.f32 %v379_v46, %v378_v25 }
  0x34   : > { %v398_v32 = vsel %vm311_vm1, %v1323_v14, 0.0  ;;  %v409_v39 = vsel %vm311_vm1, %v1324_v58, 0.0  ;;  %v1325_v51 = vmax.f32 %v1004_v4, 0.0  ;;  %v397_v6 = vadd.f32 %v396_v56, %v395_v47 }
  0x35   : > { %v1326_v62 = vmax.f32 %v993_v63, 0.0  ;;  %v410_v3 = vadd.f32 %v409_v39, %v408_v57  ;;  %v1327_v11 = vmax.f32 %v1007_v55, 0.0  ;;  %v328_v7 = vrot.slane %v327_v31, 2 }
  0x36   : > { %v411_v34 = vsel %vm311_vm1, %v1325_v51, 0.0  ;;  %v347_v21 = vrot.slane %v346_v54, 2  ;;  %v365_v17 = vadd.f32 %v364_v30, %v363_v29  ;;  %v382_v8 = vadd.f32 %v381_v43, %v380_v20 }
  0x37   : > { %v400_v40 = vsel %vm323_vm2, %v1326_v62, 0.0  ;;  %v413_v41 = vsel %vm311_vm1, %v1327_v11, 0.0  ;;  %v307_v49 = vmax.f32 %v251_v0, 0.0  ;;  %v308_v4 = vmax.f32 %v1184_v10, 0.0 }
  0x38   : > { %v399_v35 = vadd.f32 %v398_v32, %v397_v6  ;;  %v412_v37 = vadd.f32 %v411_v34, %v410_v3  ;;  %v383_v45 = vrot.slane %v382_v8, 4  ;;  %v1328_v63 = vmax.f32 %v1013_v1, 0.0 }
  0x39   : > { %v1329_v52 = vmax.f32 %v1016_v50, 0.0  ;;  %v427_v28 = vsel %vm311_vm1, %v297_v36, 0.0  ;;  %v366_v12 = vrot.slane %v365_v17, 2  ;;  %v1330_v15 = vmax.f32 %v1027_v42, 0.0 }
  0x3a   : > { %v415_v5 = vsel %vm311_vm1, %v1328_v63, 0.0  ;;  %v401_v13 = vadd.f32 %v400_v40, %v399_v35  ;;  %v414_v24 = vadd.f32 %v413_v41, %v412_v37  ;;  %v329_v18 = vadd.f32 %v328_v7, %v327_v31 }
  0x3b   : > { %v417_v55 = vsel %vm311_vm1, %v1329_v52, 0.0  ;;  %v428_v46 = vsel %vm311_vm1, %v1330_v15, 0.0  ;;  %v348_v1 = vadd.f32 %v347_v21, %v346_v54  ;;  %v384_v16 = vadd.f32 %v383_v45, %v382_v8 }
  0x3c   : > { %v1331_v56 = vmax.f32 %v1030_v60, 0.0  ;;  %v309_v19 = vmax.f32 %v253_v38, 0.0  ;;  %v402_v57 = vrot.slane %v401_v13, 4  ;;  %v416_v61 = vadd.f32 %v415_v5, %v414_v24 }
  0x3d   : > { %v429_v9 = vadd.f32 %v428_v46, %v427_v28  ;;  %v310_v36 = vmax.f32 %v254_v53, 0.0  ;;  %v385_v29 = vrot.slane %v384_v16, 2  ;;  %v1332_v25 = vmax.f32 %v1019_v2, 0.0 }
  0x3e   : > { %v430_v50 = vsel %vm311_vm1, %v1331_v56, 0.0  ;;  %v1333_v23 = vmax.f32 %v1036_v48, 0.0  ;;  %v367_v43 = vadd.f32 %v366_v12, %v365_v17  ;;  %v403_v47 = vadd.f32 %v402_v57, %v401_v13 }
  0x3f   : > { %v419_v42 = vsel %vm323_vm2, %v1332_v25, 0.0  ;;  %v418_v60 = vadd.f32 %v417_v55, %v416_v61  ;;  %v431_v14 = vadd.f32 %v430_v50, %v429_v9  ;;  %v330_v32 = vrot.slane %v329_v18, 1 }
  0x40   : > { %v432_v31 = vsel %vm311_vm1, %v1333_v23, 0.0  ;;  %v349_v58 = vrot.slane %v348_v1, 1  ;;  %v1334_v39 = vmax.f32 %v1039_v44, 0.0  ;;  %v1335_v10 = vmax.f32 %v1051_v26, 0.0 }
  0x41   : > { %v404_v54 = vrot.slane %v403_v47, 2  ;;  %v420_v30 = vadd.f32 %v419_v42, %v418_v60  ;;  %v433_v20 = vadd.f32 %v432_v31, %v431_v14  ;;  %v1336_v48 = vmax.f32 %v1057_v22, 0.0 }
  0x42   : > { %v434_v0 = vsel %vm311_vm1, %v1334_v39, 0.0  ;;  %v446_v2 = vsel %vm311_vm1, %v1335_v10, 0.0  ;;  %v386_v34 = vadd.f32 %v385_v29, %v384_v16  ;;  %v1337_v6 = vmax.f32 %v1042_v59, 0.0 }
  0x43   : > { %v447_v51 = vsel %vm311_vm1, %v1336_v48, 0.0  ;;  %v1338_v44 = vmax.f32 %v1060_v33, 0.0  ;;  %v368_v26 = vrot.slane %v367_v43, 1  ;;  %v421_v11 = vrot.slane %v420_v30, 4 }
  0x44   : > { %v436_v62 = vsel %vm311_vm1, %v1337_v6, 0.0  ;;  %v448_v40 = vadd.f32 %v447_v51, %v446_v2  ;;  %v435_v41 = vadd.f32 %v434_v0, %v433_v20  ;;  %v451_v7 = vsel %vm311_vm1, %v307_v49, 0.0 }
  0x45   : > { %v449_v3 = vsel %vm311_vm1, %v1338_v44, 0.0  ;;  %v331_v21 = vadd.f32 %v330_v32, %v329_v18  ;;  %v350_v17 = vadd.f32 %v349_v58, %v348_v1  ;;  %v1339_v22 = vmax.f32 %v1048_v27, 0.0  ;;  %v651_v58 = vld [vmem:[%s1288_s2] ss:$0 sm:$0xff] }
  0x46   : > { %v450_v35 = vadd.f32 %v449_v3, %v448_v40  ;;  %v405_v59 = vadd.f32 %v404_v54, %v403_v47  ;;  %v422_v37 = vadd.f32 %v421_v11, %v420_v30  ;;  %v437_v38 = vadd.f32 %v436_v62, %v435_v41 }
  0x47   : > { %v438_v8 = vsel %vm323_vm2, %v1339_v22, 0.0  ;;  %v453_v45 = vsel %vm311_vm1, %v308_v4, 0.0  ;;  %v387_v33 = vrot.slane %v386_v34, 1  ;;  %v369_v5 = vadd.f32 %v368_v26, %v367_v43 }
  0x48   : > { %v452_v63 = vadd.f32 %v451_v7, %v450_v35  ;;  %v423_v52 = vrot.slane %v422_v37, 2  ;;  %v439_v55 = vadd.f32 %v438_v8, %v437_v38  ;;  %v455_v28 = vsel %vm311_vm1, %v309_v19, 0.0 }
  0x49   : > { %v485_v53 = vsel %vm484_vm3, %v350_v17, %v331_v21  ;;  %v406_v27 = vrot.slane %v405_v59, 1  ;;  %v457_v24 = vsel %vm323_vm2, %v310_v36, 0.0  ;;  %v388_v15 = vadd.f32 %v387_v33, %v386_v34 }
  0x4a   : > { %v454_v49 = vadd.f32 %v453_v45, %v452_v63  ;;  %v424_v12 = vadd.f32 %v423_v52, %v422_v37  ;;  %v440_v13 = vrot.slane %v439_v55, 4  ;;  %v487_v4 = vsel %vm486_vm4, %v369_v5, %v485_v53 }
  0x4b   : > { %v407_v56 = vadd.f32 %v406_v27, %v405_v59  ;;  %v489_v19 = vsel %vm488_vm5, %v388_v15, %v487_v4 }
  0x4c   : > { %v456_v46 = vadd.f32 %v455_v28, %v454_v49  ;;  %v441_v18 = vadd.f32 %v440_v13, %v439_v55  ;;  %v425_v1 = vrot.slane %v424_v12, 1 }
  0x4d   : > { %v491_v42 = vsel %vm490_vm6, %v407_v56, %v489_v19 }
  0x4e   : > { %v458_v16 = vadd.f32 %v457_v24, %v456_v46  ;;  %v442_v50 = vrot.slane %v441_v18, 2  ;;  %v426_v9 = vadd.f32 %v425_v1, %v424_v12 }
  0x50   : > { %v459_v57 = vrot.slane %v458_v16, 4  ;;  %v443_v61 = vadd.f32 %v442_v50, %v441_v18  ;;  %v493_v43 = vsel %vm492_vm7, %v426_v9, %v491_v42 }
  0x52   : > { %v460_v29 = vadd.f32 %v459_v57, %v458_v16  ;;  %v444_v25 = vrot.slane %v443_v61, 1 }
  0x54   : > { %v461_v36 = vrot.slane %v460_v29, 2  ;;  %v445_v23 = vadd.f32 %v444_v25, %v443_v61 }
  0x56   : > { %v462_v31 = vadd.f32 %v461_v36, %v460_v29  ;;  %v495_v60 = vsel %vm494_vm8, %v445_v23, %v493_v43 }
  0x58   : > { %v463_v47 = vrot.slane %v462_v31, 1 }
  0x5a   : > { %v464_v14 = vadd.f32 %v463_v47, %v462_v31 }
  0x5c   : > { %v497_v32 = vsel %vm496_vm9, %v464_v14, %v495_v60 }
  0x5d   : > { %671 = vmatmul.mubr.msk.f32.vlgmr.msra.gmra.mxu0 %vm311_vm1, %v497_v32 }
 0x11d   : > { %v566_v39 = vpop.f32.mrf.mxu0 }
 0x11e   : > { %v567_v0 = vadd.f32 %v651_v58, %v566_v39 }
 0x11f   : > { %v672_v10 = vpop.f32.mrf.mxu0 }
 0x120   : > { %570 = vst [vmem:[%s181_s24] sm:$0xff] %v567_v0 }
 0x121   : > { %728 = shalt.err (!%p725_p3)
}
 0x122   : > { %s729_s6 = scalar_lea.hbm %s1251_s28, 128  ;;  %s733_s9 = scalar_lea.hbm %s1289_s3, 256 }
 0x123   : > { %p730_p4 = scmp.ne.s32.totalorder %s1251_s28, %s729_s6  ;;  %p734_p9 = scmp.lt.s32.totalorder %s1251_s28, %s1289_s3 }
 0x124   : > { %p735_p10 = scmp.lt.s32.totalorder %s733_s9, %s729_s6 }
 0x125   : > { %p731_p7 = pnand %p730_p4, %p838_p5 }
 0x126   : > { %p736_p11 = por %p735_p10, %p734_p9 }
 0x127   : > { %p732_p8 = pneg %p731_p7 }
 0x129   : > { %p737_p12 = pnand %p736_p11, %p732_p8 }
 0x12b   : > { %740 = shalt.err (!%p737_p12)
}
 0x12c   : > { %674 = dma.vmem_to_hbm [thread:$0]  (%p838_p5), %s586_s25, 128, %s1251_s28, %s572_s29  }
 0x12d PF: > { %p680_p13 = scmp.ge.s32.totalorder %s775_s15, 2  ;;  %s597_s17 = sand.u32 1, %s763_s12  }
 0x12e   : > { %s598_s19 = scalar_lea.sflag [#allocation3], %s597_s17 }
 0x12f   : > { %p677_p0 = pnand %p680_p13, %p842_p6 }
 0x131   : > { %p678_p1 = pneg %p677_p0 }
 0x133   : > { %758 = dma.done.wait (%p678_p1), %s598_s19, 128  }
 0x134   : > { %760 = vsyncadd (%p678_p1), %s598_s19, 4294967168  ;;  %p13_p2 = scmp.ge.s32.totalorder %s825_s18, 4   ;;  %s1340_s12 = smov %s767_s13 }
 0x135   : > { %s1341_s13 = smov %s771_s14  ;;  %s1342_s14 = smov %s836_s21 }
 0x136   : > { %s1343_s15 = smov %s825_s18  ;;  %15 = sbr.rel (!%p13_p2) target bundleno = 3 (0x3), region = 67 }
 0x13b   :  { %603 = vsyncpa [#allocation3], 1 }
 0x13c   :  { %605 = vsyncpa [#allocation3 + $0x1], 1 }

</bundles_post_ra>
